<compile_context>
chip_gen: v7x
topology: tpu7x:2x2x1
jax: 0.10.0
libtpu: 0.0.40
codegen_flags: <defaults>
</compile_context>

<pallas_src>
import functools
import math

import jax
import jax.numpy as jnp
from jax import lax
from jax.experimental import pallas as pl
from jax.experimental.pallas import tpu as pltpu


def _round_up(x, m):
    return ((x + m - 1) // m) * m


# ----------------------------------------------------------------------------
# Pallas GEMM kernels (conv-as-matmul with fused BN / ReLU / residual epilogue)
# ----------------------------------------------------------------------------
def _mm_kernel(a_ref, b_ref, s_ref, c_ref, o_ref, *, relu):
    acc = jnp.dot(a_ref[...], b_ref[...], preferred_element_type=jnp.float32)
    r = acc * s_ref[...] + c_ref[...]
    if relu:
        r = jnp.maximum(r, 0.0)
    o_ref[...] = r.astype(o_ref.dtype)


def _mm_res_kernel(a_ref, b_ref, s_ref, c_ref, res_ref, o_ref, *, relu):
    acc = jnp.dot(a_ref[...], b_ref[...], preferred_element_type=jnp.float32)
    r = acc * s_ref[...] + c_ref[...] + res_ref[...].astype(jnp.float32)
    if relu:
        r = jnp.maximum(r, 0.0)
    o_ref[...] = r.astype(o_ref.dtype)


def pallas_matmul(a, b, scale, bias, relu, residual=None,
                  out_dtype=jnp.bfloat16):
    """out[m,n] = act((a @ b)[m,n] * scale[n] + bias[n] (+ residual[m,n]))."""
    M, K = a.shape
    K2, N = b.shape
    assert K == K2
    a = a.astype(jnp.bfloat16)
    b = b.astype(jnp.bfloat16)

    # Single full-K / full-N block (weights resident); tile only M.
    if M <= 512:
        tm, Mp = M, M                      # full-dim block, no divisibility req
    else:
        tm = 256
        Mp = _round_up(M, tm)
    if Mp != M:
        a = jnp.pad(a, ((0, Mp - M), (0, 0)))
        if residual is not None:
            residual = jnp.pad(residual, ((0, Mp - M), (0, 0)))

    s = scale.reshape(1, N).astype(jnp.float32)
    c = bias.reshape(1, N).astype(jnp.float32)

    in_specs = [
        pl.BlockSpec((tm, K), lambda i: (i, 0)),
        pl.BlockSpec((K, N), lambda i: (0, 0)),    # constant -> stays resident
        pl.BlockSpec((1, N), lambda i: (0, 0)),
        pl.BlockSpec((1, N), lambda i: (0, 0)),
    ]
    args = [a, b, s, c]
    if residual is None:
        kernel = functools.partial(_mm_kernel, relu=relu)
    else:
        in_specs.append(pl.BlockSpec((tm, N), lambda i: (i, 0)))
        args.append(residual.astype(jnp.bfloat16))
        kernel = functools.partial(_mm_res_kernel, relu=relu)

    out = pl.pallas_call(
        kernel,
        out_shape=jax.ShapeDtypeStruct((Mp, N), out_dtype),
        grid=(Mp // tm,),
        in_specs=in_specs,
        out_specs=pl.BlockSpec((tm, N), lambda i: (i, 0)),
        compiler_params=pltpu.CompilerParams(
            dimension_semantics=("parallel",),
            vmem_limit_bytes=32 * 1024 * 1024),
    )(*args)
    return out[:M] if Mp != M else out


# ----------------------------------------------------------------------------
# Pallas fused stride-1 3x3 conv: shifted-tap matmuls on a flattened padded
# slab (no im2col patch tensor in HBM).  Handles arbitrary dilation d with
# padding == d (same spatial size), fused BN / ReLU / residual epilogue.
# ----------------------------------------------------------------------------
def _conv3s1_kernel(x_ref, w_ref, s_ref, c_ref, o_ref, *, offs, relu):
    L = o_ref.shape[1]
    cout = o_ref.shape[-1]
    acc = jnp.zeros((L, cout), jnp.float32)
    for t, off in enumerate(offs):
        a = x_ref[0, off:off + L, :]                     # (L, Cin) shifted tap
        acc = acc + jnp.dot(a, w_ref[t], preferred_element_type=jnp.float32)
    r = acc * s_ref[...] + c_ref[...]
    if relu:
        r = jnp.maximum(r, 0.0)
    o_ref[0] = r.astype(o_ref.dtype)


def _conv3s1_res_kernel(x_ref, w_ref, s_ref, c_ref, res_ref, o_ref, *,
                        offs, relu):
    L = o_ref.shape[1]
    cout = o_ref.shape[-1]
    acc = jnp.zeros((L, cout), jnp.float32)
    for t, off in enumerate(offs):
        a = x_ref[0, off:off + L, :]
        acc = acc + jnp.dot(a, w_ref[t], preferred_element_type=jnp.float32)
    r = acc * s_ref[...] + c_ref[...] + res_ref[0].astype(jnp.float32)
    if relu:
        r = jnp.maximum(r, 0.0)
    o_ref[0] = r.astype(o_ref.dtype)


def _conv3s1_fits_vmem(H, W, cin, cout, d, has_res):
    Hp, Wp = H + 2 * d, W + 2 * d
    L = (H - 1) * Wp + W
    need = (Hp * Wp * cin * 2 * 2          # x slab, double-buffered
            + 9 * cin * cout * 2           # resident weights
            + L * cout * (4 + 2 * 2)       # f32 accumulator + output bufs
            + (L * cout * 2 * 2 if has_res else 0))
    return need < 20 * 1024 * 1024


def conv3x3_s1_fused(x, w, d, relu, scale, bias, residual=None,
                     out_dtype=jnp.bfloat16):
    """3x3 conv, stride 1, padding == dilation == d, + BN affine (+res, ReLU)."""
    N, H, W, cin = x.shape
    cout = w.shape[0]
    xp = jnp.pad(x.astype(jnp.bfloat16), ((0, 0), (d, d), (d, d), (0, 0)))
    Hp, Wp = H + 2 * d, W + 2 * d
    xf = xp.reshape(N, Hp * Wp, cin)                     # flattened padded slab
    L = (H - 1) * Wp + W                                 # rows actually touched
    offs = tuple(ki * d * Wp + kj * d for ki in range(3) for kj in range(3))

    wm = jnp.transpose(w, (2, 3, 1, 0)).reshape(9, cin, cout).astype(jnp.bfloat16)
    s = scale.reshape(1, cout).astype(jnp.float32)
    c = bias.reshape(1, cout).astype(jnp.float32)

    in_specs = [
        pl.BlockSpec((1, Hp * Wp, cin), lambda n: (n, 0, 0)),
        pl.BlockSpec((9, cin, cout), lambda n: (0, 0, 0)),   # resident weights
        pl.BlockSpec((1, cout), lambda n: (0, 0)),
        pl.BlockSpec((1, cout), lambda n: (0, 0)),
    ]
    args = [xf, wm, s, c]
    if residual is None:
        kernel = functools.partial(_conv3s1_kernel, offs=offs, relu=relu)
    else:
        # Re-lay the residual onto the padded-width flat grid (row = i*Wp + j).
        resp = jnp.pad(residual.astype(jnp.bfloat16),
                       ((0, 0), (0, 0), (0, Wp - W), (0, 0)))
        resf = resp.reshape(N, H * Wp, cout)[:, :L, :]
        in_specs.append(pl.BlockSpec((1, L, cout), lambda n: (n, 0, 0)))
        args.append(resf)
        kernel = functools.partial(_conv3s1_res_kernel, offs=offs, relu=relu)

    out = pl.pallas_call(
        kernel,
        out_shape=jax.ShapeDtypeStruct((N, L, cout), out_dtype),
        grid=(N,),
        in_specs=in_specs,
        out_specs=pl.BlockSpec((1, L, cout), lambda n: (n, 0, 0)),
        compiler_params=pltpu.CompilerParams(
            dimension_semantics=("parallel",),
            vmem_limit_bytes=32 * 1024 * 1024),
    )(*args)
    # de-flatten: pad to H*Wp rows, drop the width-padding columns
    out = jnp.pad(out, ((0, 0), (0, H * Wp - L), (0, 0)))
    return out.reshape(N, H, Wp, cout)[:, :, :W, :]


# ----------------------------------------------------------------------------
# Pallas depthwise 3x3 kernel: shifted windows generated in-kernel (no im2col)
# ----------------------------------------------------------------------------
def _dw_kernel(x_ref, w_ref, s_ref, b_ref, o_ref, *, Ho, Wo, d):
    tc = o_ref.shape[-1]
    acc = jnp.zeros((Ho, Wo, tc), jnp.float32)
    t = 0
    for ki in range(3):
        for kj in range(3):
            win = x_ref[0, ki * d: ki * d + Ho, kj * d: kj * d + Wo, :]
            acc = acc + win.astype(jnp.float32) * w_ref[t]
            t += 1
    o_ref[0] = (acc * s_ref[0] + b_ref[0]).astype(o_ref.dtype)


def pallas_depthwise(x, dw, scale, bias, d, out_dtype=jnp.bfloat16, tc=128):
    """Depthwise 3x3 conv (stride 1, padding = dilation = d) + BN affine.
    x: (N,H,W,C) channels-last;  dw: (C,1,3,3) PyTorch layout."""
    N, H, W, C = x.shape
    assert C % tc == 0
    xp = jnp.pad(x, ((0, 0), (d, d), (d, d), (0, 0)))
    Hp, Wp = H + 2 * d, W + 2 * d
    w = jnp.transpose(dw[:, 0], (1, 2, 0)).reshape(9, 1, 1, C).astype(jnp.float32)
    s = scale.reshape(1, 1, 1, C).astype(jnp.float32)
    b = bias.reshape(1, 1, 1, C).astype(jnp.float32)

    out = pl.pallas_call(
        functools.partial(_dw_kernel, Ho=H, Wo=W, d=d),
        out_shape=jax.ShapeDtypeStruct((N, H, W, C), out_dtype),
        grid=(N, C // tc),
        in_specs=[
            pl.BlockSpec((1, Hp, Wp, tc), lambda n, c: (n, 0, 0, c)),
            pl.BlockSpec((9, 1, 1, tc), lambda n, c: (0, 0, 0, c)),
            pl.BlockSpec((1, 1, 1, tc), lambda n, c: (0, 0, 0, c)),
            pl.BlockSpec((1, 1, 1, tc), lambda n, c: (0, 0, 0, c)),
        ],
        out_specs=pl.BlockSpec((1, H, W, tc), lambda n, c: (n, 0, 0, c)),
        compiler_params=pltpu.CompilerParams(
            dimension_semantics=("parallel", "parallel")),
    )(xp, w, s, b)
    return out


# ----------------------------------------------------------------------------
# JAX glue: im2col (stem / strided convs only), BN folding, resizes, maxpool
# ----------------------------------------------------------------------------
def im2col(x, kh, kw, stride, padding, dilation):
    """x: NHWC -> patches (N*Ho*Wo, kh*kw, C), ordering (kh, kw, C)."""
    N, H, W, C = x.shape
    s, d, p = stride, dilation, padding
    Ho = (H + 2 * p - d * (kh - 1) - 1) // s + 1
    Wo = (W + 2 * p - d * (kw - 1) - 1) // s + 1
    xp = jnp.pad(x, ((0, 0), (p, p), (p, p), (0, 0))) if p > 0 else x
    cols = []
    for i in range(kh):
        for j in range(kw):
            sl = xp[:, i * d: i * d + s * (Ho - 1) + 1: s,
                    j * d: j * d + s * (Wo - 1) + 1: s, :]
            cols.append(sl)
    pat = jnp.stack(cols, axis=3)                       # (N, Ho, Wo, T, C)
    return pat.reshape(N * Ho * Wo, kh * kw, C), (N, Ho, Wo)


def bn_fold(C, eps=1e-5):
    # Inference BN with synthetic params: gamma=1, beta=0, mean=0, var=1.
    gamma = jnp.ones((C,), jnp.float32)
    beta = jnp.zeros((C,), jnp.float32)
    mean = jnp.zeros((C,), jnp.float32)
    var = jnp.ones((C,), jnp.float32)
    scale = gamma * lax.rsqrt(var + eps)
    bias = beta - mean * scale
    return scale, bias


def conv_bn(x, w, stride, padding, dilation, relu, scale=None, bias=None,
            residual=None, out_dtype=jnp.bfloat16):
    """Conv2d (bias-free) + folded BN affine (+ optional residual, ReLU)."""
    cout, cin, kh, kw = w.shape
    N, H, W, C = x.shape
    if scale is None:
        scale, bias = bn_fold(cout)

    # Fused stride-1 3x3 path: 9 shifted-tap matmuls in-kernel, no im2col.
    if (kh == 3 and kw == 3 and stride == 1 and padding == dilation
            and _conv3_ok(H, W, cin, cout, dilation, residual is not None)):
        return conv3x3_s1_fused(x, w, dilation, relu, scale, bias,
                                residual=residual, out_dtype=out_dtype)

    if kh == 1 and kw == 1 and stride == 1 and padding == 0:
        a = x.reshape(N * H * W, C)                     # 1x1 conv: no im2col
        Ho, Wo = H, W
    else:
        patches, (N, Ho, Wo) = im2col(x, kh, kw, stride, padding, dilation)
        a = patches.reshape(-1, kh * kw * cin)
    wm = jnp.transpose(w, (2, 3, 1, 0)).reshape(kh * kw * cin, cout)
    res = None if residual is None else residual.reshape(-1, cout)
    out = pallas_matmul(a, wm, scale, bias, relu, residual=res,
                        out_dtype=out_dtype)
    return out.reshape(N, Ho, Wo, cout)


def _conv3_ok(H, W, cin, cout, d, has_res):
    return _conv3s1_fits_vmem(H, W, cin, cout, d, has_res)


def maxpool_3x3_s2_p1(x):
    return lax.reduce_window(x, jnp.array(-jnp.inf, x.dtype), lax.max,
                             (1, 3, 3, 1), (1, 2, 2, 1),
                             [(0, 0), (1, 1), (1, 1), (0, 0)])


def nearest_resize(x, Hout, Wout):
    N, H, W, C = x.shape
    hi = jnp.minimum(jnp.floor(jnp.arange(Hout) * (H / Hout)).astype(jnp.int32), H - 1)
    wi = jnp.minimum(jnp.floor(jnp.arange(Wout) * (W / Wout)).astype(jnp.int32), W - 1)
    return x[:, hi][:, :, wi]


def bilinear_ac(x, Hout, Wout):
    """Bilinear resize with align_corners=True (matches F.interpolate)."""
    def lin_idx(In, Out):
        if In == 1:
            z = jnp.zeros((Out,), jnp.int32)
            return z, z, jnp.zeros((Out,), jnp.float32)
        src = jnp.arange(Out, dtype=jnp.float32) * ((In - 1) / (Out - 1))
        i0 = jnp.clip(jnp.floor(src).astype(jnp.int32), 0, In - 1)
        i1 = jnp.clip(i0 + 1, 0, In - 1)
        return i0, i1, src - i0.astype(jnp.float32)

    N, H, W, C = x.shape
    x = x.astype(jnp.float32)
    h0, h1, wh = lin_idx(H, Hout)
    w0, w1, ww = lin_idx(W, Wout)
    xw = (jnp.take(x, w0, axis=2) * (1.0 - ww)[None, None, :, None]
          + jnp.take(x, w1, axis=2) * ww[None, None, :, None])
    xh = (jnp.take(xw, h0, axis=1) * (1.0 - wh)[None, :, None, None]
          + jnp.take(xw, h1, axis=1) * wh[None, :, None, None])
    return xh


# ----------------------------------------------------------------------------
# Model pieces
# ----------------------------------------------------------------------------
def basic_block(x, p, prefix, stride, downsample):
    out = conv_bn(x, p[prefix + '.conv1'], stride, 1, 1, relu=True)
    if downsample:
        identity = conv_bn(x, p[prefix + '.down'], stride, 0, 1, relu=False)
    else:
        identity = x
    # conv2 + BN + residual add + ReLU fused into one GEMM epilogue
    return conv_bn(out, p[prefix + '.conv2'], 1, 1, 1, relu=True,
                   residual=identity)


def separable_dilation(x, dw, pw, d):
    """SeparableConv2d(dilation=d) + BN + ReLU, as used by the JPU."""
    N, H, W, C = x.shape
    s1, b1 = bn_fold(C)
    y = pallas_depthwise(x, dw, s1, b1, d)               # (N,H,W,C)
    cout = pw.shape[0]
    pw_mat = jnp.transpose(pw, (2, 3, 1, 0)).reshape(C, cout)
    s2, b2 = bn_fold(cout)
    z = pallas_matmul(y.reshape(-1, C), pw_mat, s2, b2, relu=True)
    return z.reshape(N, H, W, cout)


def forward(x_nchw, p):
    x = jnp.transpose(x_nchw, (0, 2, 3, 1)).astype(jnp.bfloat16)  # NHWC, bf16

    # --- ResNet-18 stem + layers ---
    x0 = conv_bn(x, p['conv1'], 2, 3, 1, relu=True)
    x1 = maxpool_3x3_s2_p1(x0)
    x1 = basic_block(x1, p, 'layer1.0', 1, False)
    x1 = basic_block(x1, p, 'layer1.1', 1, False)
    x2 = basic_block(x1, p, 'layer2.0', 2, True)
    x2 = basic_block(x2, p, 'layer2.1', 1, False)
    x3 = basic_block(x2, p, 'layer3.0', 2, True)
    x3 = basic_block(x3, p, 'layer3.1', 1, False)
    x4 = basic_block(x3, p, 'layer4.0', 2, True)
    x4 = basic_block(x4, p, 'layer4.1', 1, False)

    # --- JPU ---
    f0 = conv_bn(x4, p['jpu.conv0'], 1, 1, 1, relu=True)
    f1 = conv_bn(x3, p['jpu.conv1'], 1, 1, 1, relu=True)
    f2 = conv_bn(x2, p['jpu.conv2'], 1, 1, 1, relu=True)
    f3 = conv_bn(x1, p['jpu.conv3'], 1, 1, 1, relu=True)
    Ht, Wt = f3.shape[1], f3.shape[2]
    f0 = nearest_resize(f0, Ht, Wt)
    f1 = nearest_resize(f1, Ht, Wt)
    f2 = nearest_resize(f2, Ht, Wt)
    cat = jnp.concatenate([f0, f1, f2, f3], axis=-1)              # 512 ch
    ds = [separable_dilation(cat, p[f'jpu.dil{i}.dw'], p[f'jpu.dil{i}.pw'], d)
          for i, d in enumerate([1, 2, 4, 8])]
    xf = jnp.concatenate(ds, axis=-1)                             # 512 ch

    # --- ASPP (in=512, out=128, rates 4/8/12) ---
    B, H, W, _ = xf.shape
    a0 = conv_bn(xf, p['aspp.atrous0'], 1, 0, 1, relu=True)
    a1 = conv_bn(xf, p['aspp.atrous1'], 1, 4, 4, relu=True)
    a2 = conv_bn(xf, p['aspp.atrous2'], 1, 8, 8, relu=True)
    a3 = conv_bn(xf, p['aspp.atrous3'], 1, 12, 12, relu=True)
    # Global-pool branch: degenerate (B,512)x(512,128) GEMM -> plain XLA dot;
    # align_corners bilinear upsample of a 1x1 map is an exact broadcast.
    pooled = jnp.mean(xf.astype(jnp.float32), axis=(1, 2))        # (B,512)
    w4 = p['aspp.atrous4'][:, :, 0, 0].T                          # (512,128)
    s4, b4 = bn_fold(128)
    a4v = jnp.maximum(pooled @ w4 * s4 + b4, 0.0)                 # (B,128)
    a4 = jnp.broadcast_to(a4v[:, None, None, :].astype(jnp.bfloat16),
                          (B, H, W, 128))
    acat = jnp.concatenate([a0, a1, a2, a3, a4], axis=-1)         # 640 ch
    comb = conv_bn(acat, p['aspp.combine'], 1, 0, 1, relu=True)
    # TODO(synk): Dropout(0.1) implemented with eval (identity) semantics.

    # --- final 1x1 conv (with bias), commuted BEFORE the bilinear upsample ---
    # Exact: 1x1 conv is per-pixel linear and align_corners bilinear weights
    # sum to 1, so the conv (bias included) commutes with the interpolation.
    C = comb.shape[-1]
    wm = jnp.transpose(p['final_conv.w'], (2, 3, 1, 0)).reshape(C, 4)
    logits = pallas_matmul(comb.reshape(-1, C), wm,
                           jnp.ones((4,), jnp.float32), p['final_conv.b'],
                           relu=False, out_dtype=jnp.float32)
    logits = logits.reshape(B, H, W, 4)
    up = bilinear_ac(logits, 320, 480)                            # (B,320,480,4)
    return jnp.transpose(up, (0, 3, 1, 2))                        # -> NCHW


# ----------------------------------------------------------------------------
# Deterministic synthetic parameters (kaiming-uniform fan_in, relu gain)
# ----------------------------------------------------------------------------
def build_params(seed=0):
    key = [jax.random.PRNGKey(seed)]

    def nk():
        key[0], sub = jax.random.split(key[0])
        return sub

    def cw(cout, cin, k):
        fan_in = cin * k * k
        b = math.sqrt(6.0 / fan_in)
        return jax.random.uniform(nk(), (cout, cin, k, k), jnp.float32, -b, b)

    p = {}
    p['conv1'] = cw(64, 3, 7)

    def make_layer(name, cin, cout, stride):
        p[f'{name}.0.conv1'] = cw(cout, cin, 3)
        p[f'{name}.0.conv2'] = cw(cout, cout, 3)
        if stride != 1 or cin != cout:
            p[f'{name}.0.down'] = cw(cout, cin, 1)
        p[f'{name}.1.conv1'] = cw(cout, cout, 3)
        p[f'{name}.1.conv2'] = cw(cout, cout, 3)

    make_layer('layer1', 64, 64, 1)
    make_layer('layer2', 64, 128, 2)
    make_layer('layer3', 128, 256, 2)
    make_layer('layer4', 256, 512, 2)

    for i, cin in enumerate([512, 256, 128, 64]):
        p[f'jpu.conv{i}'] = cw(128, cin, 3)
    for i in range(4):
        b = math.sqrt(6.0 / 9.0)
        p[f'jpu.dil{i}.dw'] = jax.random.uniform(nk(), (512, 1, 3, 3),
                                                 jnp.float32, -b, b)
        p[f'jpu.dil{i}.pw'] = cw(128, 512, 1)

    p['aspp.atrous0'] = cw(128, 512, 1)
    p['aspp.atrous1'] = cw(128, 512, 3)
    p['aspp.atrous2'] = cw(128, 512, 3)
    p['aspp.atrous3'] = cw(128, 512, 3)
    p['aspp.atrous4'] = cw(128, 512, 1)
    p['aspp.combine'] = cw(128, 640, 1)
    p['final_conv.w'] = cw(4, 128, 1)
    p['final_conv.b'] = jnp.zeros((4,), jnp.float32)   # initialize(): bias=0
    return p


# ----------------------------------------------------------------------------
if __name__ == "__main__":
    params = build_params(seed=0)
    key = jax.random.PRNGKey(0)
    x = jax.random.normal(key, (2, 3, 64, 96), dtype=jnp.float32)  # NCHW input

    out = forward(x, params)
    out = jax.block_until_ready(out)
    assert out.shape == (2, 4, 320, 480), out.shape
    assert bool(jnp.all(jnp.isfinite(out)))
    print("KERNEL_OK")
</pallas_src>

<mosaic_0001>
module attributes {stable_mosaic.version = 11 : i64} {
  func.func @_mm_kernel(%arg0: i32, %arg1: memref<256x147xbf16, #tpu.memory_space<vmem>>, %arg2: memref<147x64xbf16, #tpu.memory_space<vmem>>, %arg3: memref<1x64xf32, #tpu.memory_space<vmem>>, %arg4: memref<1x64xf32, #tpu.memory_space<vmem>>, %arg5: memref<256x64xbf16, #tpu.memory_space<vmem>>) attributes {dimension_semantics = [#tpu.dimension_semantics<parallel>], iteration_bounds = array<i64: 12>, scalar_prefetch = 0 : i64, scratch_operands = 0 : i64, tpu.core_type = #tpu.core_type<tc>, window_params = [{transform_indices = @transform_0, window_bounds = array<i64: 256, 147>}, {pipeline_mode = #tpu.pipeline_mode<synchronous>, transform_indices = @transform_1, window_bounds = array<i64: 147, 64>}, {pipeline_mode = #tpu.pipeline_mode<synchronous>, transform_indices = @transform_2, window_bounds = array<i64: 1, 64>}, {pipeline_mode = #tpu.pipeline_mode<synchronous>, transform_indices = @transform_3, window_bounds = array<i64: 1, 64>}, {transform_indices = @transform_4, window_bounds = array<i64: 256, 64>}]} {
    %c0 = arith.constant 0 : index
    %c0_0 = arith.constant 0 : index
    %0 = vector.load %arg1[%c0, %c0_0] : memref<256x147xbf16, #tpu.memory_space<vmem>>, vector<256x147xbf16>
    %c0_1 = arith.constant 0 : index
    %c0_2 = arith.constant 0 : index
    %1 = vector.load %arg2[%c0_1, %c0_2] : memref<147x64xbf16, #tpu.memory_space<vmem>>, vector<147x64xbf16>
    %cst = arith.constant dense<0.000000e+00> : vector<256x64xf32>
    %2 = tpu.matmul %0, %1, %cst {dimension_numbers = #tpu.dot_dimension_numbers<[1], [0], [0], [1], [0, 0, 1, 1], [], []>} : vector<256x147xbf16>, vector<147x64xbf16>, vector<256x64xf32> -> vector<256x64xf32>
    %c0_3 = arith.constant 0 : index
    %c0_4 = arith.constant 0 : index
    %3 = vector.load %arg3[%c0_3, %c0_4] : memref<1x64xf32, #tpu.memory_space<vmem>>, vector<1x64xf32>
    %4 = vector.broadcast %3 : vector<1x64xf32> to vector<256x64xf32>
    %5 = arith.mulf %2, %4 : vector<256x64xf32>
    %c0_5 = arith.constant 0 : index
    %c0_6 = arith.constant 0 : index
    %6 = vector.load %arg4[%c0_5, %c0_6] : memref<1x64xf32, #tpu.memory_space<vmem>>, vector<1x64xf32>
    %7 = vector.broadcast %6 : vector<1x64xf32> to vector<256x64xf32>
    %8 = arith.addf %5, %7 : vector<256x64xf32>
    %cst_7 = arith.constant 0.000000e+00 : f32
    %9 = vector.broadcast %cst_7 : f32 to vector<256x64xf32>
    %10 = arith.maximumf %8, %9 : vector<256x64xf32>
    %11 = arith.truncf %10 : vector<256x64xf32> to vector<256x64xbf16>
    %c0_8 = arith.constant 0 : index
    %c0_9 = arith.constant 0 : index
    %12 = vector.load %arg5[%c0_8, %c0_9] : memref<256x64xbf16, #tpu.memory_space<vmem>>, vector<256x64xbf16>
    tpu.vector_store %arg5[%c0_8, %c0_9], %11 {strides = array<i32>} : memref<256x64xbf16, #tpu.memory_space<vmem>>, vector<256x64xbf16>,
    return
  }
  func.func @transform_0(%arg0: i32) -> (i32, i32) {
    %c0_i32 = arith.constant 0 : i32
    %c0_i32_0 = arith.constant 0 : i32
    return %arg0, %c0_i32 : i32, i32
  }
  func.func @transform_1(%arg0: i32) -> (i32, i32) {
    %c0_i32 = arith.constant 0 : i32
    %c0_i32_0 = arith.constant 0 : i32
    %c0_i32_1 = arith.constant 0 : i32
    return %c0_i32, %c0_i32_0 : i32, i32
  }
  func.func @transform_2(%arg0: i32) -> (i32, i32) {
    %c0_i32 = arith.constant 0 : i32
    %c0_i32_0 = arith.constant 0 : i32
    %c0_i32_1 = arith.constant 0 : i32
    return %c0_i32, %c0_i32_0 : i32, i32
  }
  func.func @transform_3(%arg0: i32) -> (i32, i32) {
    %c0_i32 = arith.constant 0 : i32
    %c0_i32_0 = arith.constant 0 : i32
    %c0_i32_1 = arith.constant 0 : i32
    return %c0_i32, %c0_i32_0 : i32, i32
  }
  func.func @transform_4(%arg0: i32) -> (i32, i32) {
    %c0_i32 = arith.constant 0 : i32
    %c0_i32_0 = arith.constant 0 : i32
    return %arg0, %c0_i32 : i32, i32
  }
}

</mosaic_0001>

<bundles_post_ra>
// kernel: tpu_custom_call.1
= control target key start
LH: loop header
LB: loop body
LE: loop exit
PB: predicated region body
PF: predicated region fallthrough
CT: control target
= control target key end

     0   :  { %s1261_s15 = smov 0   ;;  %s1502_s0 = inlined_call_operand.vmem [shape: bf16[3072,147], index: 0, kind: input, shape index: {}]   ;;  %s1503_s1 = inlined_call_operand.vmem [shape: bf16[147,64], index: 1, kind: input, shape index: {}]   ;;  %s1504_s2 = inlined_call_operand.vmem [shape: f32[1,64], index: 2, kind: input, shape index: {}]   ;;  %s1505_s3 = inlined_call_operand.vmem [shape: f32[1,64], index: 3, kind: input, shape index: {}]   ;;  %s1506_s4 = inlined_call_operand.vmem [shape: bf16[3072,64], index: 4, kind: output, shape index: {}]  }
   0x1 LB: > { %s1001_s16 = sadd.s32 4294967295, %s1232_s15   ;;  %p1005_p0 = scmp.ge.s32.totalorder %s1232_s15, 1  ;;  %s1232_s15 = sphi %s1261_s15, %s14_s15  }
   0x2   : > { %p164_p1 = scmp.lt.s32.totalorder %s1232_s15, 13 }
   0x4   : > { %p165_p2 = pnand %p1005_p0, %p164_p1 }
   0x5   : > { %v1168_v0 = vld [vmem:[%s1503_s1] sm:$0xff] (!%p165_p2)   ;;  %v1234_v1 = vmov (!%p165_p2), 0   ;;  %v1169_v2 = vld [vmem:[%s1503_s1 + $0x8] sm:$0xff] (!%p165_p2)   ;;  %v1170_v3 = vld [vmem:[%s1503_s1 + $0x10] sm:$0xff] (!%p165_p2)   ;;  %s1006_s23 = sshll.u32 (!%p165_p2), %s1001_s16, 5  ;;  %vm457_vm0 = vcmask (!%p165_p2), 154624  }
   0x6   : > { %168 = sbr.rel (%p165_p2) target bundleno = 325 (0x145), region = 36  ;;  %513 = vmatprep.subr.bf16.mxu0 (!%p165_p2), %v1234_v1  ;;  %1138 = vmatprep.subr.bf16.mxu1 (!%p165_p2), %v1234_v1  ;;  %p192_p3 = scmp.lt.s32.totalorder (!%p165_p2), %s1006_s23, 383  ;;  %v1171_v4 = vld [vmem:[%s1503_s1 + $0x18] sm:$0xff] (!%p165_p2)   ;;  %v1172_v5 = vld [vmem:[%s1503_s1 + $0x20] sm:$0xff] (!%p165_p2)   ;;  %v1173_v8 = vld [vmem:[%s1503_s1 + $0x28] sm:$0xff] (!%p165_p2)   ;;  %vm506_vm1 = vcmask (!%p165_p2), 1040384  }
   0x7   : > { %514 = vmatpush1.bf16.msra.mxu0 (!%p165_p2), %v1168_v0  ;;  %1148 = vmatpush1.bf16.msra.mxu1 (!%p165_p2), %v1168_v0  ;;  %v1174_v9 = vld [vmem:[%s1503_s1 + $0x30] sm:$0xff] (!%p165_p2)   ;;  %v1175_v10 = vld [vmem:[%s1503_s1 + $0x38] sm:$0xff] (!%p165_p2)   ;;  %vm507_vm2 = vcmask (!%p165_p2), 1041408   ;;  %v1235_v11 = vmov (!%p165_p2), 65535   ;;  %v1176_v13 = vld [vmem:[%s1503_s1 + $0x40] sm:$0xff] (!%p165_p2)   ;;  %vm912_vm3 = vcmask (!%p165_p2), 519168  }
   0x8   : > { %515 = vmatprep.subr.bf16.mxu0 (!%p165_p2), %v1234_v1  ;;  %1139 = vmatprep.subr.bf16.mxu1 (!%p165_p2), %v1234_v1  ;;  %v508_v12 = vsel (!%p165_p2), %vm506_vm1, 4294967295, %v1235_v11  ;;  %v1177_v14 = vld [vmem:[%s1503_s1 + $0x48] ss:$0 sps:$4 sm:$0x33] (!%p165_p2)   ;;  %v1358_v47 = vld [vmem:[%s1504_s2] ss:$0 sm:$0xff] (!%p165_p2) }
   0x9   : > { %v509_v15 = vsel (!%p165_p2), %vm507_vm2, %v508_v12, 0  ;;  %v1363_v49 = vld [vmem:[%s1505_s3] ss:$0 sm:$0xff] (!%p165_p2) }
   0xa   : > { %v511_v16 = vand.u32 (!%p165_p2), %v1177_v14, %v509_v15 }
   0xb   : > { %516 = vmatpush1.bf16.msra.mxu0 (!%p165_p2), %v1169_v2  ;;  %1149 = vmatpush1.bf16.msra.mxu1 (!%p165_p2), %v1169_v2 }
   0xc   : > { %517 = vmatprep.subr.bf16.mxu0 (!%p165_p2), %v1234_v1  ;;  %1140 = vmatprep.subr.bf16.mxu1 (!%p165_p2), %v1234_v1 }
   0xd   : > { %s1508_s23 = smov (!%p192_p3, %s1006_s23), 383 }
   0xe   : > { %s1105_s26 = sshll.u32 %s1508_s23, 3  ;;  %s1010_s21 = sshll.u32 %s1508_s23, 2 }
   0xf   : > { %518 = vmatpush1.bf16.msra.mxu0 %v1170_v3  ;;  %1150 = vmatpush1.bf16.msra.mxu1 %v1170_v3  ;;  %s1287_s29 = scalar_lea.vmem %s1502_s0, %s1105_s26  ;;  %s1377_s23 = scalar_lea.vmem %s1506_s4, %s1010_s21 }
  0x10   : > { %519 = vmatprep.subr.bf16.mxu0 %v1234_v1  ;;  %1141 = vmatprep.subr.bf16.mxu1 %v1234_v1  ;;  %v1180_v6 = vld [vmem:[%s1287_s29 + $0x4] ss:$8 sps:$4 sm:$0xff]   ;;  %v1178_v17 = vld [vmem:[%s1287_s29] ss:$8 sps:$4 sm:$0xff]   ;;  %v1184_v19 = vld [vmem:[%s1287_s29 + $0x14] ss:$8 sps:$4 sm:$0xff]  }
  0x11   : > { %v1183_v7 = vld [vmem:[%s1287_s29 + $0x84] ss:$8 sps:$4 sm:$0xff]   ;;  %1053 = vmatprep.mubr.msk.bf16.mxu0 %vm457_vm0, %v1180_v6  ;;  %v1181_v18 = vld [vmem:[%s1287_s29 + $0x80] ss:$8 sps:$4 sm:$0xff]   ;;  %v1186_v20 = vld [vmem:[%s1287_s29 + $0x94] ss:$8 sps:$4 sm:$0xff]  }
  0x12   : > { %1061 = vmatprep.mubr.msk.bf16.mxu1 %vm457_vm0, %v1183_v7  ;;  %v1188_v21 = vld [vmem:[%s1287_s29 + $0x10] ss:$8 sps:$4 sm:$0xff]   ;;  %v1190_v23 = vld [vmem:[%s1287_s29 + $0x24] ss:$8 sps:$4 sm:$0xff]   ;;  %v1194_v25 = vld [vmem:[%s1287_s29 + $0x20] ss:$8 sps:$4 sm:$0xff]  }
  0x13   : > { %520 = vmatpush1.bf16.msra.mxu0 %v1171_v4  ;;  %1151 = vmatpush1.bf16.msra.mxu1 %v1171_v4  ;;  %v1189_v22 = vld [vmem:[%s1287_s29 + $0x90] ss:$8 sps:$4 sm:$0xff]   ;;  %v1192_v24 = vld [vmem:[%s1287_s29 + $0xa4] ss:$8 sps:$4 sm:$0xff]   ;;  %v1195_v26 = vld [vmem:[%s1287_s29 + $0xa0] ss:$8 sps:$4 sm:$0xff]  }
  0x14   : > { %521 = vmatprep.subr.bf16.mxu0 %v1234_v1  ;;  %1142 = vmatprep.subr.bf16.mxu1 %v1234_v1  ;;  %v1196_v27 = vld [vmem:[%s1287_s29 + $0x34] ss:$8 sps:$4 sm:$0xff]   ;;  %v1200_v29 = vld [vmem:[%s1287_s29 + $0x30] ss:$8 sps:$4 sm:$0xff]   ;;  %v1202_v31 = vld [vmem:[%s1287_s29 + $0x44] ss:$8 sps:$4 sm:$0xff]  }
  0x15   : > { %v1198_v28 = vld [vmem:[%s1287_s29 + $0xb4] ss:$8 sps:$4 sm:$0xff]   ;;  %v1201_v30 = vld [vmem:[%s1287_s29 + $0xb0] ss:$8 sps:$4 sm:$0xff]   ;;  %v1204_v32 = vld [vmem:[%s1287_s29 + $0xc4] ss:$8 sps:$4 sm:$0xff]  }
  0x16   : > { %v1206_v33 = vld [vmem:[%s1287_s29 + $0x40] ss:$8 sps:$4 sm:$0xff]   ;;  %v1208_v35 = vld [vmem:[%s1287_s29 + $0x54] ss:$8 sps:$4 sm:$0xff]   ;;  %v1212_v37 = vld [vmem:[%s1287_s29 + $0x50] ss:$8 sps:$4 sm:$0xff]  }
  0x17   : > { %522 = vmatpush1.bf16.msra.mxu0 %v1172_v5  ;;  %1152 = vmatpush1.bf16.msra.mxu1 %v1172_v5  ;;  %v1207_v34 = vld [vmem:[%s1287_s29 + $0xc0] ss:$8 sps:$4 sm:$0xff]   ;;  %v1210_v36 = vld [vmem:[%s1287_s29 + $0xd4] ss:$8 sps:$4 sm:$0xff]   ;;  %v1213_v38 = vld [vmem:[%s1287_s29 + $0xd0] ss:$8 sps:$4 sm:$0xff]  }
  0x18   : > { %523 = vmatprep.subr.bf16.mxu0 %v1234_v1  ;;  %1143 = vmatprep.subr.bf16.mxu1 %v1234_v1  ;;  %v1214_v39 = vld [vmem:[%s1287_s29 + $0x64] ss:$8 sps:$4 sm:$0xff]   ;;  %v1218_v41 = vld [vmem:[%s1287_s29 + $0x60] ss:$8 sps:$4 sm:$0xff]   ;;  %v1220_v43 = vld [vmem:[%s1287_s29 + $0x74] ss:$8 sps:$4 sm:$0xff]  }
  0x19   : > { %v1216_v40 = vld [vmem:[%s1287_s29 + $0xe4] ss:$8 sps:$4 sm:$0xff]   ;;  %v1219_v42 = vld [vmem:[%s1287_s29 + $0xe0] ss:$8 sps:$4 sm:$0xff]   ;;  %v1222_v44 = vld [vmem:[%s1287_s29 + $0xf4] ss:$8 sps:$4 sm:$0xff]  }
  0x1a   : > { %v1224_v45 = vld [vmem:[%s1287_s29 + $0x70] ss:$8 sps:$4 sm:$0xff]  }
  0x1b   : > { %524 = vmatpush1.bf16.msra.mxu0 %v1173_v8  ;;  %1153 = vmatpush1.bf16.msra.mxu1 %v1173_v8  ;;  %v1225_v46 = vld [vmem:[%s1287_s29 + $0xf0] ss:$8 sps:$4 sm:$0xff]  }
  0x1c   : > { %525 = vmatprep.subr.bf16.mxu0 %v1234_v1  ;;  %1144 = vmatprep.subr.bf16.mxu1 %v1234_v1 }
  0x1f   : > { %526 = vmatpush1.bf16.msra.mxu0 %v1174_v9  ;;  %1154 = vmatpush1.bf16.msra.mxu1 %v1174_v9 }
  0x20   : > { %527 = vmatprep.subr.bf16.mxu0 %v1234_v1  ;;  %1145 = vmatprep.subr.bf16.mxu1 %v1234_v1 }
  0x23   : > { %528 = vmatpush1.bf16.msra.mxu0 %v1175_v10  ;;  %1155 = vmatpush1.bf16.msra.mxu1 %v1175_v10 }
  0x24   : > { %529 = vmatprep.subr.bf16.mxu0 %v1234_v1  ;;  %1146 = vmatprep.subr.bf16.mxu1 %v1234_v1 }
  0x27   : > { %530 = vmatpush1.bf16.msra.mxu0 %v1176_v13  ;;  %1156 = vmatpush1.bf16.msra.mxu1 %v1176_v13 }
  0x28   : > { %531 = vmatprep.subr.bf16.mxu0 %v1234_v1  ;;  %1147 = vmatprep.subr.bf16.mxu1 %v1234_v1 }
  0x2b   : > { %532 = vmatpush1.bf16.msra.mxu0 %v511_v16  ;;  %1157 = vmatpush1.bf16.msra.mxu1 %v511_v16 }
  0x2e   : > { %546 = vmatmul.mubr.bf16.vlgmr.msra.gmra.mrb[0].mxu0 %v1178_v17  ;;  %610 = vmatmul.mubr.bf16.vlgmr.msra.gmra.mrb[0].mxu1 %v1181_v18 }
  0x2f   : > { %1054 = vmatprep.mubr.msk.bf16.mxu0 %vm457_vm0, %v1184_v19  ;;  %1062 = vmatprep.mubr.msk.bf16.mxu1 %vm457_vm0, %v1186_v20 }
  0x36   : > { %554 = vmatmul.mubr.bf16.gmra.mrb[4].mxu0 %v1188_v21  ;;  %618 = vmatmul.mubr.bf16.gmra.mrb[4].mxu1 %v1189_v22 }
  0x37   : > { %1055 = vmatprep.mubr.msk.bf16.mxu0 %vm457_vm0, %v1190_v23  ;;  %1063 = vmatprep.mubr.msk.bf16.mxu1 %vm457_vm0, %v1192_v24 }
  0x3e   : > { %562 = vmatmul.mubr.bf16.gmra.mrb[8].mxu0 %v1194_v25  ;;  %626 = vmatmul.mubr.bf16.gmra.mrb[8].mxu1 %v1195_v26 }
  0x3f   : > { %1056 = vmatprep.mubr.msk.bf16.mxu0 %vm457_vm0, %v1196_v27  ;;  %1064 = vmatprep.mubr.msk.bf16.mxu1 %vm457_vm0, %v1198_v28 }
  0x46   : > { %570 = vmatmul.mubr.bf16.gmra.mrb[12].mxu0 %v1200_v29  ;;  %634 = vmatmul.mubr.bf16.gmra.mrb[12].mxu1 %v1201_v30 }
  0x47   : > { %1057 = vmatprep.mubr.msk.bf16.mxu0 %vm457_vm0, %v1202_v31  ;;  %1065 = vmatprep.mubr.msk.bf16.mxu1 %vm457_vm0, %v1204_v32 }
  0x4e   : > { %578 = vmatmul.mubr.bf16.gmra.mrb[16].mxu0 %v1206_v33  ;;  %642 = vmatmul.mubr.bf16.gmra.mrb[16].mxu1 %v1207_v34 }
  0x4f   : > { %1058 = vmatprep.mubr.msk.bf16.mxu0 %vm457_vm0, %v1208_v35  ;;  %1066 = vmatprep.mubr.msk.bf16.mxu1 %vm457_vm0, %v1210_v36 }
  0x56   : > { %586 = vmatmul.mubr.bf16.gmra.mrb[20].mxu0 %v1212_v37  ;;  %650 = vmatmul.mubr.bf16.gmra.mrb[20].mxu1 %v1213_v38 }
  0x57   : > { %1059 = vmatprep.mubr.msk.bf16.mxu0 %vm457_vm0, %v1214_v39  ;;  %1067 = vmatprep.mubr.msk.bf16.mxu1 %vm457_vm0, %v1216_v40 }
  0x5e   : > { %594 = vmatmul.mubr.bf16.gmra.mrb[24].mxu0 %v1218_v41  ;;  %658 = vmatmul.mubr.bf16.gmra.mrb[24].mxu1 %v1219_v42 }
  0x5f   : > { %1060 = vmatprep.mubr.msk.bf16.mxu0 %vm457_vm0, %v1220_v43  ;;  %1068 = vmatprep.mubr.msk.bf16.mxu1 %vm457_vm0, %v1222_v44 }
  0x66   : > { %602 = vmatmul.mubr.bf16.gmra.mrb[28].mxu0 %v1224_v45  ;;  %666 = vmatmul.mubr.bf16.gmra.mrb[28].mxu1 %v1225_v46 }
 0x101   : > { %v547_v48 = vpop.f32.mrb[0].mxu0  ;;  %v611_v50 = vpop.f32.mrb[0].mxu1 }
 0x102   : > { %v681_v51 = vmul.f32 %v1358_v47, %v547_v48  ;;  %v697_v52 = vmul.f32 %v1358_v47, %v611_v50  ;;  %v549_v53 = vpop.f32.mrb[1].mxu0  ;;  %v613_v54 = vpop.f32.mrb[1].mxu1 }
 0x103   : > { %v550_v55 = vpop.f32.mrb[2].mxu0  ;;  %v614_v56 = vpop.f32.mrb[2].mxu1 }
 0x104   : > { %v720_v57 = vadd.f32 %v1363_v49, %v681_v51  ;;  %v736_v58 = vadd.f32 %v1363_v49, %v697_v52  ;;  %v682_v59 = vmul.f32 %v1358_v47, %v550_v55  ;;  %v698_v60 = vmul.f32 %v1358_v47, %v614_v56  ;;  %v552_v61 = vpop.f32.mrb[3].mxu0  ;;  %v616_v62 = vpop.f32.mrb[3].mxu1 }
 0x106   : > { %v752_v63 = vmax.f32 %v720_v57, 0.0  ;;  %v768_v0 = vmax.f32 %v736_v58, 0.0  ;;  %v721_v1 = vadd.f32 %v1363_v49, %v682_v59  ;;  %v737_v2 = vadd.f32 %v1363_v49, %v698_v60 }
 0x108   : > { %v1106_v3 = vpack.c.bf16 %v752_v63, %v752_v63  ;;  %v1122_v4 = vpack.c.bf16 %v768_v0, %v768_v0  ;;  %v753_v5 = vmax.f32 %v721_v1, 0.0  ;;  %v769_v6 = vmax.f32 %v737_v2, 0.0 }
 0x109   : > { %v555_v7 = vpop.f32.mrb[4].mxu0  ;;  %v619_v8 = vpop.f32.mrb[4].mxu1 }
 0x10a   : > { %913 = vst.msk [vmem:[%s1377_s23] sm:$0xf] %vm912_vm3, %v1106_v3  ;;  %929 = vst.msk [vmem:[%s1377_s23 + $0x40] sm:$0xf] %vm912_vm3, %v1122_v4  ;;  %v1107_v9 = vpack.c.bf16 %v753_v5, %v753_v5  ;;  %v1123_v10 = vpack.c.bf16 %v769_v6, %v769_v6  ;;  %v683_v11 = vmul.f32 %v1358_v47, %v555_v7  ;;  %v557_v13 = vpop.f32.mrb[5].mxu0  ;;  %v621_v14 = vpop.f32.mrb[5].mxu1 }
 0x10b   : > { %v699_v12 = vmul.f32 %v1358_v47, %v619_v8  ;;  %v558_v15 = vpop.f32.mrb[6].mxu0  ;;  %v622_v16 = vpop.f32.mrb[6].mxu1 }
 0x10c   : > { %914 = vst.msk [vmem:[%s1377_s23 + $0x4] sm:$0xf] %vm912_vm3, %v1107_v9  ;;  %930 = vst.msk [vmem:[%s1377_s23 + $0x44] sm:$0xf] %vm912_vm3, %v1123_v10  ;;  %v722_v17 = vadd.f32 %v1363_v49, %v683_v11  ;;  %v684_v19 = vmul.f32 %v1358_v47, %v558_v15  ;;  %v700_v20 = vmul.f32 %v1358_v47, %v622_v16  ;;  %v560_v21 = vpop.f32.mrb[7].mxu0  ;;  %v624_v22 = vpop.f32.mrb[7].mxu1 }
 0x10d   : > { %v738_v18 = vadd.f32 %v1363_v49, %v699_v12 }
 0x10e   : > { %v754_v23 = vmax.f32 %v722_v17, 0.0  ;;  %v723_v25 = vadd.f32 %v1363_v49, %v684_v19  ;;  %v739_v26 = vadd.f32 %v1363_v49, %v700_v20 }
 0x10f   : > { %v770_v24 = vmax.f32 %v738_v18, 0.0 }
 0x110   : > { %v1108_v27 = vpack.c.bf16 %v754_v23, %v754_v23  ;;  %v755_v29 = vmax.f32 %v723_v25, 0.0  ;;  %v771_v30 = vmax.f32 %v739_v26, 0.0 }
 0x111   : > { %v1124_v28 = vpack.c.bf16 %v770_v24, %v770_v24  ;;  %v563_v31 = vpop.f32.mrb[8].mxu0  ;;  %v627_v32 = vpop.f32.mrb[8].mxu1 }
 0x112   : > { %915 = vst.msk [vmem:[%s1377_s23 + $0x8] sm:$0xf] %vm912_vm3, %v1108_v27  ;;  %v1109_v33 = vpack.c.bf16 %v755_v29, %v755_v29  ;;  %v1125_v34 = vpack.c.bf16 %v771_v30, %v771_v30  ;;  %v685_v35 = vmul.f32 %v1358_v47, %v563_v31  ;;  %v701_v36 = vmul.f32 %v1358_v47, %v627_v32  ;;  %v565_v37 = vpop.f32.mrb[9].mxu0  ;;  %v629_v38 = vpop.f32.mrb[9].mxu1 }
 0x113   : > { %931 = vst.msk [vmem:[%s1377_s23 + $0x48] sm:$0xf] %vm912_vm3, %v1124_v28  ;;  %v566_v39 = vpop.f32.mrb[10].mxu0  ;;  %v630_v40 = vpop.f32.mrb[10].mxu1 }
 0x114   : > { %916 = vst.msk [vmem:[%s1377_s23 + $0xc] sm:$0xf] %vm912_vm3, %v1109_v33  ;;  %932 = vst.msk [vmem:[%s1377_s23 + $0x4c] sm:$0xf] %vm912_vm3, %v1125_v34  ;;  %v724_v41 = vadd.f32 %v1363_v49, %v685_v35  ;;  %v740_v42 = vadd.f32 %v1363_v49, %v701_v36  ;;  %v686_v43 = vmul.f32 %v1358_v47, %v566_v39  ;;  %v568_v45 = vpop.f32.mrb[11].mxu0  ;;  %v632_v46 = vpop.f32.mrb[11].mxu1 }
 0x115   : > { %v702_v44 = vmul.f32 %v1358_v47, %v630_v40 }
 0x116   : > { %v756_v48 = vmax.f32 %v724_v41, 0.0  ;;  %v772_v50 = vmax.f32 %v740_v42, 0.0  ;;  %v725_v51 = vadd.f32 %v1363_v49, %v686_v43 }
 0x117   : > { %v741_v52 = vadd.f32 %v1363_v49, %v702_v44 }
 0x118   : > { %v1110_v53 = vpack.c.bf16 %v756_v48, %v756_v48  ;;  %v1126_v54 = vpack.c.bf16 %v772_v50, %v772_v50  ;;  %v757_v55 = vmax.f32 %v725_v51, 0.0 }
 0x119   : > { %v773_v56 = vmax.f32 %v741_v52, 0.0  ;;  %v571_v57 = vpop.f32.mrb[12].mxu0  ;;  %v635_v58 = vpop.f32.mrb[12].mxu1 }
 0x11a   : > { %917 = vst.msk [vmem:[%s1377_s23 + $0x10] sm:$0xf] %vm912_vm3, %v1110_v53  ;;  %933 = vst.msk [vmem:[%s1377_s23 + $0x50] sm:$0xf] %vm912_vm3, %v1126_v54  ;;  %v1111_v59 = vpack.c.bf16 %v757_v55, %v757_v55  ;;  %v687_v61 = vmul.f32 %v1358_v47, %v571_v57  ;;  %v703_v62 = vmul.f32 %v1358_v47, %v635_v58  ;;  %v573_v63 = vpop.f32.mrb[13].mxu0  ;;  %v637_v0 = vpop.f32.mrb[13].mxu1 }
 0x11b   : > { %v1127_v60 = vpack.c.bf16 %v773_v56, %v773_v56  ;;  %v574_v1 = vpop.f32.mrb[14].mxu0  ;;  %v638_v2 = vpop.f32.mrb[14].mxu1 }
 0x11c   : > { %918 = vst.msk [vmem:[%s1377_s23 + $0x14] sm:$0xf] %vm912_vm3, %v1111_v59  ;;  %v726_v3 = vadd.f32 %v1363_v49, %v687_v61  ;;  %v742_v4 = vadd.f32 %v1363_v49, %v703_v62  ;;  %v688_v5 = vmul.f32 %v1358_v47, %v574_v1  ;;  %v704_v6 = vmul.f32 %v1358_v47, %v638_v2  ;;  %v576_v7 = vpop.f32.mrb[15].mxu0  ;;  %v640_v8 = vpop.f32.mrb[15].mxu1 }
 0x11d   : > { %934 = vst.msk [vmem:[%s1377_s23 + $0x54] sm:$0xf] %vm912_vm3, %v1127_v60 }
 0x11e   : > { %v758_v9 = vmax.f32 %v726_v3, 0.0  ;;  %v774_v10 = vmax.f32 %v742_v4, 0.0  ;;  %v727_v11 = vadd.f32 %v1363_v49, %v688_v5  ;;  %v743_v12 = vadd.f32 %v1363_v49, %v704_v6 }
 0x120   : > { %v1112_v13 = vpack.c.bf16 %v758_v9, %v758_v9  ;;  %v1128_v14 = vpack.c.bf16 %v774_v10, %v774_v10  ;;  %v759_v15 = vmax.f32 %v727_v11, 0.0  ;;  %v775_v16 = vmax.f32 %v743_v12, 0.0 }
 0x121   : > { %v579_v17 = vpop.f32.mrb[16].mxu0  ;;  %v643_v18 = vpop.f32.mrb[16].mxu1 }
 0x122   : > { %919 = vst.msk [vmem:[%s1377_s23 + $0x18] sm:$0xf] %vm912_vm3, %v1112_v13  ;;  %935 = vst.msk [vmem:[%s1377_s23 + $0x58] sm:$0xf] %vm912_vm3, %v1128_v14  ;;  %v1113_v19 = vpack.c.bf16 %v759_v15, %v759_v15  ;;  %v1129_v20 = vpack.c.bf16 %v775_v16, %v775_v16  ;;  %v689_v21 = vmul.f32 %v1358_v47, %v579_v17  ;;  %v581_v23 = vpop.f32.mrb[17].mxu0  ;;  %v645_v24 = vpop.f32.mrb[17].mxu1 }
 0x123   : > { %v705_v22 = vmul.f32 %v1358_v47, %v643_v18  ;;  %v582_v25 = vpop.f32.mrb[18].mxu0  ;;  %v646_v26 = vpop.f32.mrb[18].mxu1 }
 0x124   : > { %920 = vst.msk [vmem:[%s1377_s23 + $0x1c] sm:$0xf] %vm912_vm3, %v1113_v19  ;;  %936 = vst.msk [vmem:[%s1377_s23 + $0x5c] sm:$0xf] %vm912_vm3, %v1129_v20  ;;  %v728_v27 = vadd.f32 %v1363_v49, %v689_v21  ;;  %v690_v29 = vmul.f32 %v1358_v47, %v582_v25  ;;  %v706_v30 = vmul.f32 %v1358_v47, %v646_v26  ;;  %v584_v31 = vpop.f32.mrb[19].mxu0  ;;  %v648_v32 = vpop.f32.mrb[19].mxu1 }
 0x125   : > { %v744_v28 = vadd.f32 %v1363_v49, %v705_v22 }
 0x126   : > { %v760_v33 = vmax.f32 %v728_v27, 0.0  ;;  %v729_v35 = vadd.f32 %v1363_v49, %v690_v29  ;;  %v745_v36 = vadd.f32 %v1363_v49, %v706_v30 }
 0x127   : > { %v776_v34 = vmax.f32 %v744_v28, 0.0 }
 0x128   : > { %v1114_v37 = vpack.c.bf16 %v760_v33, %v760_v33  ;;  %v761_v39 = vmax.f32 %v729_v35, 0.0  ;;  %v777_v40 = vmax.f32 %v745_v36, 0.0 }
 0x129   : > { %v1130_v38 = vpack.c.bf16 %v776_v34, %v776_v34  ;;  %v587_v41 = vpop.f32.mrb[20].mxu0  ;;  %v651_v42 = vpop.f32.mrb[20].mxu1 }
 0x12a   : > { %921 = vst.msk [vmem:[%s1377_s23 + $0x20] sm:$0xf] %vm912_vm3, %v1114_v37  ;;  %v1115_v43 = vpack.c.bf16 %v761_v39, %v761_v39  ;;  %v1131_v44 = vpack.c.bf16 %v777_v40, %v777_v40  ;;  %v691_v45 = vmul.f32 %v1358_v47, %v587_v41  ;;  %v707_v46 = vmul.f32 %v1358_v47, %v651_v42  ;;  %v589_v48 = vpop.f32.mrb[21].mxu0  ;;  %v653_v50 = vpop.f32.mrb[21].mxu1 }
 0x12b   : > { %937 = vst.msk [vmem:[%s1377_s23 + $0x60] sm:$0xf] %vm912_vm3, %v1130_v38  ;;  %v590_v51 = vpop.f32.mrb[22].mxu0  ;;  %v654_v52 = vpop.f32.mrb[22].mxu1 }
 0x12c   : > { %922 = vst.msk [vmem:[%s1377_s23 + $0x24] sm:$0xf] %vm912_vm3, %v1115_v43  ;;  %938 = vst.msk [vmem:[%s1377_s23 + $0x64] sm:$0xf] %vm912_vm3, %v1131_v44  ;;  %v730_v53 = vadd.f32 %v1363_v49, %v691_v45  ;;  %v746_v54 = vadd.f32 %v1363_v49, %v707_v46  ;;  %v692_v55 = vmul.f32 %v1358_v47, %v590_v51  ;;  %v592_v57 = vpop.f32.mrb[23].mxu0  ;;  %v656_v58 = vpop.f32.mrb[23].mxu1 }
 0x12d   : > { %v708_v56 = vmul.f32 %v1358_v47, %v654_v52 }
 0x12e   : > { %v762_v59 = vmax.f32 %v730_v53, 0.0  ;;  %v778_v60 = vmax.f32 %v746_v54, 0.0  ;;  %v731_v61 = vadd.f32 %v1363_v49, %v692_v55 }
 0x12f   : > { %v747_v62 = vadd.f32 %v1363_v49, %v708_v56 }
 0x130   : > { %v1116_v63 = vpack.c.bf16 %v762_v59, %v762_v59  ;;  %v1132_v0 = vpack.c.bf16 %v778_v60, %v778_v60  ;;  %v763_v1 = vmax.f32 %v731_v61, 0.0 }
 0x131   : > { %v779_v2 = vmax.f32 %v747_v62, 0.0  ;;  %v595_v3 = vpop.f32.mrb[24].mxu0  ;;  %v659_v4 = vpop.f32.mrb[24].mxu1 }
 0x132   : > { %923 = vst.msk [vmem:[%s1377_s23 + $0x28] sm:$0xf] %vm912_vm3, %v1116_v63  ;;  %939 = vst.msk [vmem:[%s1377_s23 + $0x68] sm:$0xf] %vm912_vm3, %v1132_v0  ;;  %v1117_v5 = vpack.c.bf16 %v763_v1, %v763_v1  ;;  %v693_v7 = vmul.f32 %v1358_v47, %v595_v3  ;;  %v709_v8 = vmul.f32 %v1358_v47, %v659_v4  ;;  %v597_v9 = vpop.f32.mrb[25].mxu0  ;;  %v661_v10 = vpop.f32.mrb[25].mxu1 }
 0x133   : > { %v1133_v6 = vpack.c.bf16 %v779_v2, %v779_v2  ;;  %v598_v11 = vpop.f32.mrb[26].mxu0  ;;  %v662_v12 = vpop.f32.mrb[26].mxu1 }
 0x134   : > { %924 = vst.msk [vmem:[%s1377_s23 + $0x2c] sm:$0xf] %vm912_vm3, %v1117_v5  ;;  %v732_v13 = vadd.f32 %v1363_v49, %v693_v7  ;;  %v748_v14 = vadd.f32 %v1363_v49, %v709_v8  ;;  %v694_v15 = vmul.f32 %v1358_v47, %v598_v11  ;;  %v710_v16 = vmul.f32 %v1358_v47, %v662_v12  ;;  %v600_v17 = vpop.f32.mrb[27].mxu0  ;;  %v664_v18 = vpop.f32.mrb[27].mxu1 }
 0x135   : > { %940 = vst.msk [vmem:[%s1377_s23 + $0x6c] sm:$0xf] %vm912_vm3, %v1133_v6 }
 0x136   : > { %v764_v19 = vmax.f32 %v732_v13, 0.0  ;;  %v780_v20 = vmax.f32 %v748_v14, 0.0  ;;  %v733_v21 = vadd.f32 %v1363_v49, %v694_v15  ;;  %v749_v22 = vadd.f32 %v1363_v49, %v710_v16 }
 0x138   : > { %v1118_v23 = vpack.c.bf16 %v764_v19, %v764_v19  ;;  %v1134_v24 = vpack.c.bf16 %v780_v20, %v780_v20  ;;  %v765_v25 = vmax.f32 %v733_v21, 0.0  ;;  %v781_v26 = vmax.f32 %v749_v22, 0.0 }
 0x139   : > { %v603_v27 = vpop.f32.mrb[28].mxu0  ;;  %v667_v28 = vpop.f32.mrb[28].mxu1 }
 0x13a   : > { %925 = vst.msk [vmem:[%s1377_s23 + $0x30] sm:$0xf] %vm912_vm3, %v1118_v23  ;;  %941 = vst.msk [vmem:[%s1377_s23 + $0x70] sm:$0xf] %vm912_vm3, %v1134_v24  ;;  %v1119_v29 = vpack.c.bf16 %v765_v25, %v765_v25  ;;  %v1135_v30 = vpack.c.bf16 %v781_v26, %v781_v26  ;;  %v695_v31 = vmul.f32 %v1358_v47, %v603_v27  ;;  %v605_v33 = vpop.f32.mrb[29].mxu0  ;;  %v669_v34 = vpop.f32.mrb[29].mxu1 }
 0x13b   : > { %v711_v32 = vmul.f32 %v1358_v47, %v667_v28  ;;  %v606_v35 = vpop.f32.mrb[30].mxu0  ;;  %v670_v36 = vpop.f32.mrb[30].mxu1 }
 0x13c   : > { %926 = vst.msk [vmem:[%s1377_s23 + $0x34] sm:$0xf] %vm912_vm3, %v1119_v29  ;;  %942 = vst.msk [vmem:[%s1377_s23 + $0x74] sm:$0xf] %vm912_vm3, %v1135_v30  ;;  %v734_v37 = vadd.f32 %v1363_v49, %v695_v31  ;;  %v696_v39 = vmul.f32 %v1358_v47, %v606_v35  ;;  %v712_v40 = vmul.f32 %v1358_v47, %v670_v36  ;;  %v608_v41 = vpop.f32.mrb[31].mxu0  ;;  %v672_v42 = vpop.f32.mrb[31].mxu1 }
 0x13d   : > { %v750_v38 = vadd.f32 %v1363_v49, %v711_v32 }
 0x13e   : > { %v766_v43 = vmax.f32 %v734_v37, 0.0  ;;  %v735_v45 = vadd.f32 %v1363_v49, %v696_v39  ;;  %v751_v46 = vadd.f32 %v1363_v49, %v712_v40 }
 0x13f   : > { %v782_v44 = vmax.f32 %v750_v38, 0.0 }
 0x140   : > { %v1120_v48 = vpack.c.bf16 %v766_v43, %v766_v43  ;;  %v767_v51 = vmax.f32 %v735_v45, 0.0  ;;  %v783_v52 = vmax.f32 %v751_v46, 0.0 }
 0x141   : > { %v1136_v50 = vpack.c.bf16 %v782_v44, %v782_v44 }
 0x142   : > { %927 = vst.msk [vmem:[%s1377_s23 + $0x38] sm:$0xf] %vm912_vm3, %v1120_v48  ;;  %v1121_v53 = vpack.c.bf16 %v767_v51, %v767_v51  ;;  %v1137_v54 = vpack.c.bf16 %v783_v52, %v783_v52 }
 0x143   : > { %943 = vst.msk [vmem:[%s1377_s23 + $0x78] sm:$0xf] %vm912_vm3, %v1136_v50 }
 0x144   : > { %928 = vst.msk [vmem:[%s1377_s23 + $0x3c] sm:$0xf] %vm912_vm3, %v1121_v53  ;;  %944 = vst.msk [vmem:[%s1377_s23 + $0x7c] sm:$0xf] %vm912_vm3, %v1137_v54 }
 0x145 PF: > { %s14_s15 = sadd.s32 1, %s1232_s15  }
 0x146   : > { %p11_p4 = scmp.ge.s32.totalorder %s14_s15, 14  }
 0x148   :  { %13 = sbr.rel (!%p11_p4) target bundleno = 1 (0x1), region = 66 }

</bundles_post_ra>
